<compile_context>
chip_gen: v5e
topology: v5e:2x2
jax: 0.10.0
libtpu: 0.0.40
codegen_flags: <defaults>
</compile_context>

<pallas_src>
import dataclasses
import functools
import math

import jax
import jax.numpy as jnp
from jax.experimental import pallas as pl
from jax.experimental.pallas import tpu as pltpu


_VMEM_BUDGET = 24 * 1024 * 1024   # planner budget for double-buffered tiles (safe on v5e/v6e/v7x)
_TM_PREF = 256
_TN_PREF = 512


def _round_up(a, m):
    return ((a + m - 1) // m) * m


def _pick_tile(total, pref, gran):
    """Largest multiple of `gran` that divides `total` and is <= pref (>= gran)."""
    t = (min(pref, total) // gran) * gran
    while t > gran and total % t != 0:
        t -= gran
    return max(t, gran)


def _granularity(dim):
    # Prefer 256 (v6e/v7x MXU is 2x256x256) when it adds no padded HBM bytes
    # beyond the mandatory 128-lane multiple; otherwise stay at 128.
    return 256 if _round_up(dim, 128) % 256 == 0 else 128


def _vmem_bytes(tm, tn, tk, cbytes, obytes):
    # double-buffered x, w, bias input blocks + output block
    return 2 * (tm * tk * cbytes + tk * tn * cbytes + tn * 4 + tm * tn * obytes)


def _vmem_limit_bytes(needed):
    try:
        cap = int(pltpu.get_tpu_info().vmem_capacity_bytes)
    except Exception:
        cap = 64 * 1024 * 1024            # conservative: v7x per-TC VMEM
    headroom = 16 * 1024 * 1024           # leave room for Mosaic-internal scratch
    limit = min(max(2 * needed, 32 * 1024 * 1024), cap - headroom)
    return max(limit, needed + 2 * 1024 * 1024)


@dataclasses.dataclass(frozen=True)
class _Plan:
    in_dim: int
    out_dim: int
    Kp: int
    Np: int
    tn: int
    tk: int
    gN: int
    single_shot: bool
    compute_dtype: object
    scale: float
    lr_mul: float


def _make_plan(in_dim, out_dim, lr_mul, compute_dtype, max_tk):
    gN = _granularity(out_dim)
    gK = _granularity(in_dim)
    Np = _round_up(out_dim, gN)
    Kp = _round_up(in_dim, gK)
    tn = _pick_tile(Np, _TN_PREF, gN)
    cbytes = jnp.dtype(compute_dtype).itemsize

    def fits(tk):
        return _vmem_bytes(_TM_PREF, tn, tk, cbytes, 4) <= _VMEM_BUDGET

    if Kp <= max_tk and fits(Kp):
        tk, single_shot = Kp, True          # collapse the K grid axis entirely
    else:
        cand = (min(max_tk, Kp) // gK) * gK
        while cand > gK:
            if Kp % cand == 0 and fits(cand):
                break
            cand -= gK
        tk, single_shot = max(cand, gK), False

    scale = (1.0 / math.sqrt(in_dim)) * lr_mul
    return _Plan(in_dim=in_dim, out_dim=out_dim, Kp=Kp, Np=Np, tn=tn, tk=tk,
                 gN=gN, single_shot=single_shot, compute_dtype=compute_dtype,
                 scale=scale, lr_mul=lr_mul)


def _prepare_params(weight, bias, plan):
    """One-time parameter prep (do at init, not per forward call):
    weight (out,in) -> transposed/padded/cast (Kp, Np); bias*lr_mul padded (1, Np)."""
    in_dim, out_dim = plan.in_dim, plan.out_dim
    wp = jnp.pad(weight.T.astype(plan.compute_dtype),
                 ((0, plan.Kp - in_dim), (0, plan.Np - out_dim)))
    bp = jnp.pad((bias * plan.lr_mul).astype(jnp.float32),
                 (0, plan.Np - out_dim)).reshape(1, plan.Np)
    return wp, bp


def _equal_linear_kernel(x_ref, w_ref, b_ref, o_ref, *, scale):
    # Single step over K: x (tm, Kp) @ w (Kp, tn) on the MXU with f32 accumulation;
    # scalar equalized-lr scale + pre-scaled bias applied in the epilogue.
    acc = jnp.dot(x_ref[...], w_ref[...], preferred_element_type=jnp.float32)
    o_ref[...] = (acc * scale + b_ref[...]).astype(o_ref.dtype)


def _equal_linear_kernel_ktiled(x_ref, w_ref, b_ref, o_ref, *, scale):
    # Fallback for very large K: accumulate directly into the resident f32 output
    # block (its index_map is (i, j) for every k), no scratch needed.
    k = pl.program_id(2)

    @pl.when(k == 0)
    def _():
        o_ref[...] = jnp.zeros_like(o_ref)

    o_ref[...] += jnp.dot(x_ref[...], w_ref[...], preferred_element_type=jnp.float32)

    @pl.when(k == pl.num_programs(2) - 1)
    def _():
        o_ref[...] = o_ref[...] * scale + b_ref[...]


def _apply(x, wp, bp, *, plan):
    B, in_dim = x.shape
    assert in_dim == plan.in_dim
    cbytes = jnp.dtype(plan.compute_dtype).itemsize
    gM = 16 if cbytes == 2 else 8          # bf16 packs two rows per sublane
    Mp = _round_up(B, gM)
    tm = _pick_tile(Mp, _TM_PREF, gM)
    tn = plan.tn

    # v7x megacore: make sure at least one parallel grid axis has >= 2 blocks.
    if (Mp // tm) * (plan.Np // tn) == 1:
        if Mp >= 2 * gM:
            tm = _pick_tile(Mp, Mp // 2, gM)
        elif plan.Np >= 2 * plan.gN:
            tn = _pick_tile(plan.Np, plan.Np // 2, plan.gN)

    xp = jnp.pad(x, ((0, Mp - B), (0, plan.Kp - in_dim))).astype(plan.compute_dtype)

    kernel = functools.partial(
        _equal_linear_kernel if plan.single_shot else _equal_linear_kernel_ktiled,
        scale=plan.scale)

    if plan.single_shot:
        out_dtype = x.dtype
        tk = plan.Kp
        grid = (Mp // tm, plan.Np // tn)
        in_specs = [
            pl.BlockSpec((tm, plan.Kp), lambda i, j: (i, 0)),
            pl.BlockSpec((plan.Kp, tn), lambda i, j: (0, j)),
            pl.BlockSpec((1, tn), lambda i, j: (0, j)),
        ]
        out_specs = pl.BlockSpec((tm, tn), lambda i, j: (i, j))
        semantics = ("parallel", "parallel")
    else:
        out_dtype = jnp.float32            # accumulate in place; cast after slicing
        tk = plan.tk
        grid = (Mp // tm, plan.Np // tn, plan.Kp // tk)
        in_specs = [
            pl.BlockSpec((tm, tk), lambda i, j, k: (i, k)),
            pl.BlockSpec((tk, tn), lambda i, j, k: (k, j)),
            pl.BlockSpec((1, tn), lambda i, j, k: (0, j)),
        ]
        out_specs = pl.BlockSpec((tm, tn), lambda i, j, k: (i, j))
        semantics = ("parallel", "parallel", "arbitrary")

    needed = _vmem_bytes(tm, tn, tk, cbytes, jnp.dtype(out_dtype).itemsize)

    out = pl.pallas_call(
        kernel,
        out_shape=jax.ShapeDtypeStruct((Mp, plan.Np), out_dtype),
        grid_spec=pltpu.PrefetchScalarGridSpec(
            num_scalar_prefetch=0,
            grid=grid,
            in_specs=in_specs,
            out_specs=out_specs,
        ),
        compiler_params=pltpu.CompilerParams(
            dimension_semantics=semantics,
            vmem_limit_bytes=_vmem_limit_bytes(needed),
        ),
    )(xp, wp, bp)

    return out[:B, :plan.out_dim].astype(x.dtype)


def make_equal_linear(weight, bias, *, lr_mul=1.0, compute_dtype=jnp.bfloat16,
                      max_tk=8192):
    """Module-style factory: prepare params once, return a jitted apply(x)."""
    out_dim, in_dim = weight.shape
    plan = _make_plan(in_dim, out_dim, lr_mul, compute_dtype, max_tk)
    wp, bp = _prepare_params(weight, bias, plan)
    apply_fn = jax.jit(functools.partial(_apply, plan=plan))
    return lambda x: apply_fn(x, wp, bp)


def equal_linear(x, weight, bias, *, lr_mul=1.0, compute_dtype=jnp.bfloat16,
                 max_tk=8192):
    """One-shot functional form. Call under jit so the weight transpose/pad/cast
    fuses with the surrounding graph instead of an extra HBM pass."""
    out_dim, in_dim = weight.shape
    plan = _make_plan(in_dim, out_dim, lr_mul, compute_dtype, max_tk)
    wp, bp = _prepare_params(weight, bias, plan)
    return _apply(x, wp, bp, plan=plan)


def equal_linear_ref(x, weight, bias, *, lr_mul=1.0):
    scale = (1.0 / math.sqrt(x.shape[-1])) * lr_mul
    return x @ (weight * scale).T + bias * lr_mul


if __name__ == "__main__":
    key = jax.random.PRNGKey(0)
    k_x, k_w, k_x2, k_w2, k_b2 = jax.random.split(key, 5)

    # --- Test 1: module-like small shapes, bf16 MXU operands (default) ---
    batch, in_dim, out_dim = 8, 32, 64
    lr_mul = 0.01
    weight = jax.random.normal(k_w, (out_dim, in_dim), jnp.float32) / lr_mul
    bias = jnp.zeros((out_dim,), jnp.float32)
    x = jax.random.normal(k_x, (batch, in_dim), jnp.float32)

    layer = make_equal_linear(weight, bias, lr_mul=lr_mul)   # one-time param prep
    out = jax.block_until_ready(layer(x))
    ref = equal_linear_ref(x, weight, bias, lr_mul=lr_mul)
    assert out.shape == (batch, out_dim)
    # bf16 operand precision, f32 accumulation
    assert jnp.allclose(out, ref, atol=5e-2, rtol=5e-2), "mismatch (test 1, bf16)"

    # --- Test 2: f32 compute path, tiled (M, N) grid, single-shot K ---
    batch2, in_dim2, out_dim2 = 64, 384, 256
    weight2 = jax.random.normal(k_w2, (out_dim2, in_dim2), jnp.float32)
    bias2 = jax.random.normal(k_b2, (out_dim2,), jnp.float32)
    x2 = jax.random.normal(k_x2, (batch2, in_dim2), jnp.float32)

    el_f32 = jax.jit(functools.partial(equal_linear, lr_mul=1.0,
                                       compute_dtype=jnp.float32))
    out2 = jax.block_until_ready(el_f32(x2, weight2, bias2))
    ref2 = equal_linear_ref(x2, weight2, bias2, lr_mul=1.0)
    assert out2.shape == (batch2, out_dim2)
    assert jnp.allclose(out2, ref2, atol=1e-3, rtol=1e-4), "mismatch (test 2, f32)"

    # --- Test 3: force the K-tiled fallback (accumulate into resident o_ref) ---
    el_kt = jax.jit(functools.partial(equal_linear, lr_mul=1.0,
                                      compute_dtype=jnp.float32, max_tk=128))
    out3 = jax.block_until_ready(el_kt(x2, weight2, bias2))
    assert jnp.allclose(out3, ref2, atol=1e-3, rtol=1e-4), "mismatch (test 3, K-tiled)"

    print("KERNEL_OK")
</pallas_src>

<mosaic_0001>
module attributes {stable_mosaic.version = 11 : i64} {
  func.func @_equal_linear_kernel(%arg0: i32, %arg1: i32, %arg2: memref<16x128xbf16, #tpu.memory_space<vmem>>, %arg3: memref<128x128xbf16, #tpu.memory_space<vmem>>, %arg4: memref<1x128xf32, #tpu.memory_space<vmem>>, %arg5: memref<16x128xf32, #tpu.memory_space<vmem>>) attributes {dimension_semantics = [#tpu.dimension_semantics<parallel>, #tpu.dimension_semantics<parallel>], iteration_bounds = array<i64: 1, 1>, scalar_prefetch = 0 : i64, scratch_operands = 0 : i64, tpu.core_type = #tpu.core_type<tc>, window_params = [{transform_indices = @transform_0, window_bounds = array<i64: 16, 128>}, {transform_indices = @transform_1, window_bounds = array<i64: 128, 128>}, {transform_indices = @transform_2, window_bounds = array<i64: 1, 128>}, {transform_indices = @transform_3, window_bounds = array<i64: 16, 128>}]} {
    %c0 = arith.constant 0 : index
    %c0_0 = arith.constant 0 : index
    %0 = vector.load %arg2[%c0, %c0_0] : memref<16x128xbf16, #tpu.memory_space<vmem>>, vector<16x128xbf16>
    %c0_1 = arith.constant 0 : index
    %c0_2 = arith.constant 0 : index
    %1 = vector.load %arg3[%c0_1, %c0_2] : memref<128x128xbf16, #tpu.memory_space<vmem>>, vector<128x128xbf16>
    %cst = arith.constant dense<0.000000e+00> : vector<16x128xf32>
    %2 = tpu.matmul %0, %1, %cst {dimension_numbers = #tpu.dot_dimension_numbers<[1], [0], [0], [1], [0, 0, 1, 1], [], []>} : vector<16x128xbf16>, vector<128x128xbf16>, vector<16x128xf32> -> vector<16x128xf32>
    %cst_3 = arith.constant 0.00176776689 : f32
    %3 = vector.broadcast %cst_3 : f32 to vector<16x128xf32>
    %4 = arith.mulf %2, %3 : vector<16x128xf32>
    %c0_4 = arith.constant 0 : index
    %c0_5 = arith.constant 0 : index
    %5 = vector.load %arg4[%c0_4, %c0_5] : memref<1x128xf32, #tpu.memory_space<vmem>>, vector<1x128xf32>
    %6 = vector.broadcast %5 : vector<1x128xf32> to vector<16x128xf32>
    %7 = arith.addf %4, %6 : vector<16x128xf32>
    %c0_6 = arith.constant 0 : index
    %c0_7 = arith.constant 0 : index
    %8 = vector.load %arg5[%c0_6, %c0_7] : memref<16x128xf32, #tpu.memory_space<vmem>>, vector<16x128xf32>
    tpu.vector_store %arg5[%c0_6, %c0_7], %7 {strides = array<i32>} : memref<16x128xf32, #tpu.memory_space<vmem>>, vector<16x128xf32>,
    return
  }
  func.func @transform_0(%arg0: i32, %arg1: i32) -> (i32, i32) {
    %c0_i32 = arith.constant 0 : i32
    %c0_i32_0 = arith.constant 0 : i32
    return %arg0, %c0_i32 : i32, i32
  }
  func.func @transform_1(%arg0: i32, %arg1: i32) -> (i32, i32) {
    %c0_i32 = arith.constant 0 : i32
    %c0_i32_0 = arith.constant 0 : i32
    return %c0_i32, %arg1 : i32, i32
  }
  func.func @transform_2(%arg0: i32, %arg1: i32) -> (i32, i32) {
    %c0_i32 = arith.constant 0 : i32
    %c0_i32_0 = arith.constant 0 : i32
    return %c0_i32, %arg1 : i32, i32
  }
  func.func @transform_3(%arg0: i32, %arg1: i32) -> (i32, i32) {
    %c0_i32 = arith.constant 0 : i32
    return %arg0, %arg1 : i32, i32
  }
}

</mosaic_0001>

<bundles_post_ra>
// kernel: _apply.1
= control target key start
LH: loop header
LB: loop body
LE: loop exit
PB: predicated region body
PF: predicated region fallthrough
CT: control target
= control target key end

     0   :  { %8 = vsyncpa [#allocation3], 0  ;;  %s206_s15 = smov [#allocation2]   ;;  %s207_s17 = smov 64   ;;  %s244_s0 = inlined_call_operand.vmem [shape: bf16[16,128], index: 0, kind: input, shape index: {}]   ;;  %s245_s1 = inlined_call_operand.hbm [shape: bf16[128,128], index: 1, kind: input, shape index: {}]   ;;  %s246_s2 = inlined_call_operand.vmem [shape: f32[1,128], index: 2, kind: input, shape index: {}]   ;;  %s247_s3 = inlined_call_operand.vmem [shape: f32[16,128], index: 3, kind: output, shape index: {}]  }
   0x1   :  { %s15_s14 = sshll.u32 %s245_s1, 4  ;;  %s17_s16 = sshll.u32 %s206_s15, 4  ;;  %s16_s14 = int_to_ptr.hbm [resolvable:$true] %s15_s14  ;;  %s18_s16 = int_to_ptr.vmem [resolvable:$true] %s17_s16 }
   0x2   :  { %s208_s18 = smov 4  }
   0x3   :  { %23 = dma.hbm_to_vmem [thread:$0]  %s16_s14, 1024, %s18_s16, [#allocation3], %s207_s17, %s207_s17, %s208_s18  }
   0x4   :  { %204 = dma.done.wait [#allocation3], 1024  }
   0x5   :  { %205 = vsyncadd [#allocation3], 4294966272  ;;  %v175_v0 = vld [vmem:[#allocation2 + $0x38] sm:$0xff]  ;;  %v174_v1 = vld [vmem:[#allocation2 + $0x30] sm:$0xff] }
   0x6   :  { %102 = vmatpush.bf16.msra.mxu0 %v175_v0  ;;  %v173_v2 = vld [vmem:[#allocation2 + $0x28] sm:$0xff]  ;;  %v172_v3 = vld [vmem:[#allocation2 + $0x20] sm:$0xff]  ;;  %v171_v4 = vld [vmem:[#allocation2 + $0x18] sm:$0xff] }
   0x7   :  { %v170_v5 = vld [vmem:[#allocation2 + $0x10] sm:$0xff]  ;;  %v169_v6 = vld [vmem:[#allocation2 + $0x8] sm:$0xff]  ;;  %v168_v7 = vld [vmem:[#allocation2] sm:$0xff] }
   0x8   :  { %v167_v8 = vld [vmem:[%s244_s0] sm:$0xff] }
   0x9   :  { %v179_v9 = vld [vmem:[%s246_s2] ss:$0 sm:$0xff] }
   0xa   :  { %103 = vmatpush.bf16.msra.mxu0 %v174_v1 }
   0xe   :  { %104 = vmatpush.bf16.msra.mxu0 %v173_v2 }
  0x12   :  { %105 = vmatpush.bf16.msra.mxu0 %v172_v3 }
  0x16   :  { %106 = vmatpush.bf16.msra.mxu0 %v171_v4 }
  0x1a   :  { %107 = vmatpush.bf16.msra.mxu0 %v170_v5 }
  0x1e   :  { %108 = vmatpush.bf16.msra.mxu0 %v169_v6 }
  0x22   :  { %109 = vmatpush.bf16.msra.mxu0 %v168_v7 }
  0x25   :  { %110 = vmatmul.bf16.vlgmr.msra.gmra.mxu0 %v167_v8 }
  0xa2   :  { %v111_v10 = vpop.f32.mrf.mxu0 }
  0xa3   :  { %v116_v11 = vmul.f32 0.0017677669, %v111_v10 }
  0xa5   :  { %v122_v12 = vadd.f32 %v179_v9, %v116_v11 }
  0xa7   :  { %124 = vst [vmem:[%s247_s3] sm:$0xff] %v122_v12 }
  0xaa   :  { %v113_v13 = vpop.f32.mrf.mxu0 }
  0xab   :  { %v117_v14 = vmul.f32 0.0017677669, %v113_v13 }
  0xad   :  { %v123_v15 = vadd.f32 %v179_v9, %v117_v14 }
  0xaf   :  { %125 = vst [vmem:[%s247_s3 + $0x8] sm:$0xff] %v123_v15 }
  0xb0   :  { %130 = vsyncpa [#allocation3], 1 }

</bundles_post_ra>
